<compile_context>
chip_gen: v6e
topology: v6e:2x2x1
jax: 0.10.0
libtpu: 0.0.40
codegen_flags: <defaults>
</compile_context>

<pallas_src>
import jax
import jax.numpy as jnp
import numpy as np
from jax.experimental import pallas as pl
from jax.experimental.pallas import tpu as pltpu

# ImageNet normalization constants (from the module __init__).
IMAGENET_MEAN = np.array([0.485, 0.456, 0.406], dtype=np.float32)
IMAGENET_STD = np.array([0.229, 0.224, 0.225], dtype=np.float32)

# Fold (x - mean) / std into one FMA per element: x * (1/std) + (-mean/std).
# (Not bit-identical to a subtract-then-divide, but well inside 1e-5.)
_SCALE = tuple(float(v) for v in (1.0 / IMAGENET_STD))
_BIAS = tuple(float(v) for v in (-IMAGENET_MEAN / IMAGENET_STD))

_MiB = 1024 * 1024


def _norm_kernel(x_ref, o_ref):
    # Block shape: (n_tile, 3, rows, lanes).  Channel axis is folded into the
    # block, so scale/bias are baked scalar constants and each channel slice is
    # a static index — no SMEM reads, no broadcasts, one VPU FMA per slice.
    for ci in range(3):
        o_ref[:, ci, :, :] = (
            x_ref[:, ci, :, :] * _SCALE[ci] + _BIAS[ci]
        ).astype(o_ref.dtype)


def _tile_budget_and_vmem_limit():
    """(per-tile byte budget, vmem_limit_bytes) sized for the local TPU gen."""
    vmem_cap = 64 * _MiB  # conservative default (v7x-sized) if query fails
    try:
        info = pltpu.get_tpu_info()
        vmem_cap = int(getattr(info, "vmem_capacity_bytes", vmem_cap))
    except Exception:
        pass
    if vmem_cap <= 64 * _MiB:
        # v7x-class: 64 MiB physical VMEM per TensorCore.  8 MiB tiles ->
        # ~32 MiB double-buffered in+out, under a 48 MiB scoped limit.
        return 8 * _MiB, 48 * _MiB
    # v5e / v6e: 128 MiB physical VMEM.
    return 8 * _MiB, 64 * _MiB


def _largest_divisor_within(n: int, unit_bytes: int, budget_bytes: int) -> int:
    """Largest divisor d of n with d * unit_bytes <= budget_bytes (>= 1)."""
    best = 1
    for d in range(1, n + 1):
        if n % d == 0 and d * unit_bytes <= budget_bytes:
            best = d
    return best


def _largest_divisor_leq(n: int, cap: int) -> int:
    cap = max(1, min(n, cap))
    for d in range(cap, 0, -1):
        if n % d == 0:
            return d
    return 1


def imagenet_input_norm(x: jax.Array, *, donate_input: bool = False) -> jax.Array:
    """(x - mean) / std over the channel axis of an NCHW tensor; C must be 3."""
    n, c, h, w = x.shape
    assert c == 3, "ImageNetInputNorm expects 3 input channels"

    hw = h * w
    itemsize = jnp.dtype(x.dtype).itemsize
    budget, vmem_limit = _tile_budget_and_vmem_limit()

    lane_dense = (hw % 128 == 0)
    if lane_dense:
        # Lane-dense layout: last dim = 128 full lanes -> unmasked stores.
        rows = hw // 128
        x_view = x.reshape(n, 3, rows, 128)
        row_bytes = 3 * 128 * itemsize          # one 128-lane row, all channels
        slab_bytes = rows * row_bytes           # one image, all channels

        if slab_bytes <= budget:
            r_tile = rows
            n_tile = _largest_divisor_within(n, slab_bytes, budget)
        else:
            # Single image+channels slab exceeds the budget: split the row axis
            # (r_tile a multiple of 8 keeps the (8,128) block constraint).
            n_tile = 1
            r_tile = min(rows, max(8, (budget // row_bytes) // 8 * 8))

        grid_n = n // n_tile
        grid_r = pl.cdiv(rows, r_tile)

        # Keep >= 2 grid steps whenever splittable so v7x's two TensorCores
        # both get work (no cost on single-TC v5e/v6e at these tile sizes).
        if grid_n * grid_r < 2:
            if n >= 2:
                n_tile = _largest_divisor_leq(n, n // 2)
                grid_n = n // n_tile
            elif rows >= 16:
                r_tile = max(8, (rows // 2) // 8 * 8)
                grid_r = pl.cdiv(rows, r_tile)

        grid = (grid_n, grid_r)
        block_shape = (n_tile, 3, r_tile, 128)
    else:
        # Fallback: flatten H,W to one trailing lane axis so only the final
        # <128-lane tail is a masked store.  Last two block dims equal the full
        # array dims, so no (8,128) divisibility constraint applies.
        x_view = x.reshape(n, 3, 1, hw)
        slab_bytes = 3 * hw * itemsize
        n_tile = _largest_divisor_within(n, slab_bytes, budget)
        if n // n_tile < 2 and n >= 2:
            n_tile = _largest_divisor_leq(n, n // 2)
        grid = (n // n_tile, 1)
        block_shape = (n_tile, 3, 1, hw)

    index_map = lambda ni, ri: (ni, 0, ri, 0)

    out = pl.pallas_call(
        _norm_kernel,
        out_shape=jax.ShapeDtypeStruct(x_view.shape, x.dtype),
        grid_spec=pltpu.PrefetchScalarGridSpec(
            num_scalar_prefetch=0,
            grid=grid,
            in_specs=[pl.BlockSpec(block_shape, index_map)],
            out_specs=pl.BlockSpec(block_shape, index_map),
        ),
        compiler_params=pltpu.CompilerParams(
            dimension_semantics=("parallel", "parallel"),
            vmem_limit_bytes=vmem_limit,
        ),
        input_output_aliases=({0: 0} if donate_input else {}),
    )(x_view)

    return out.reshape(n, 3, h, w)


if __name__ == "__main__":
    key = jax.random.PRNGKey(0)
    mean = jnp.asarray(IMAGENET_MEAN).reshape(1, 3, 1, 1)
    std = jnp.asarray(IMAGENET_STD).reshape(1, 3, 1, 1)

    # Lane-dense path (H*W % 128 == 0).
    x = jax.random.uniform(key, (2, 3, 16, 16), dtype=jnp.float32)
    out = jax.block_until_ready(imagenet_input_norm(x))
    ref = (x - mean) / std
    assert out.shape == x.shape and out.dtype == x.dtype
    assert jnp.allclose(out, ref, atol=1e-5, rtol=1e-5)

    # Non-lane-dense fallback path (H*W % 128 != 0).
    x2 = jax.random.uniform(jax.random.PRNGKey(0), (2, 3, 5, 7), dtype=jnp.float32)
    out2 = jax.block_until_ready(imagenet_input_norm(x2))
    ref2 = (x2 - mean) / std
    assert out2.shape == x2.shape and out2.dtype == x2.dtype
    assert jnp.allclose(out2, ref2, atol=1e-5, rtol=1e-5)

    print("KERNEL_OK")
</pallas_src>

<mosaic_0001>
module attributes {stable_mosaic.version = 11 : i64} {
  func.func @_norm_kernel(%arg0: i32, %arg1: i32, %arg2: memref<1x3x2x128xf32, #tpu.memory_space<vmem>>, %arg3: memref<1x3x2x128xf32, #tpu.memory_space<vmem>>) attributes {dimension_semantics = [#tpu.dimension_semantics<parallel>, #tpu.dimension_semantics<parallel>], iteration_bounds = array<i64: 2, 1>, scalar_prefetch = 0 : i64, scratch_operands = 0 : i64, tpu.core_type = #tpu.core_type<tc>, window_params = [{transform_indices = @transform_0, window_bounds = array<i64: 1, 3, 2, 128>}, {transform_indices = @transform_1, window_bounds = array<i64: 1, 3, 2, 128>}]} {
    %c0 = arith.constant 0 : index
    %c0_0 = arith.constant 0 : index
    %c0_1 = arith.constant 0 : index
    %c0_2 = arith.constant 0 : index
    %0 = vector.load %arg2[%c0, %c0_0, %c0_1, %c0_2] : memref<1x3x2x128xf32, #tpu.memory_space<vmem>>, vector<1x1x2x128xf32>
    %1 = vector.shape_cast %0 : vector<1x1x2x128xf32> to vector<1x2x128xf32>
    %cst = arith.constant 4.36681223 : f32
    %2 = vector.broadcast %cst : f32 to vector<1x2x128xf32>
    %3 = arith.mulf %1, %2 : vector<1x2x128xf32>
    %cst_3 = arith.constant -2.11790395 : f32
    %4 = vector.broadcast %cst_3 : f32 to vector<1x2x128xf32>
    %5 = arith.addf %3, %4 : vector<1x2x128xf32>
    %c0_4 = arith.constant 0 : index
    %c0_5 = arith.constant 0 : index
    %c0_6 = arith.constant 0 : index
    %c0_7 = arith.constant 0 : index
    %6 = vector.load %arg3[%c0_4, %c0_5, %c0_6, %c0_7] : memref<1x3x2x128xf32, #tpu.memory_space<vmem>>, vector<1x1x2x128xf32>
    %7 = vector.shape_cast %6 : vector<1x1x2x128xf32> to vector<1x2x128xf32>
    %8 = vector.shape_cast %5 : vector<1x2x128xf32> to vector<1x1x2x128xf32>
    tpu.vector_store %arg3[%c0_4, %c0_5, %c0_6, %c0_7], %8 {strides = array<i32>} : memref<1x3x2x128xf32, #tpu.memory_space<vmem>>, vector<1x1x2x128xf32>,
    %c0_8 = arith.constant 0 : index
    %c1 = arith.constant 1 : index
    %c0_9 = arith.constant 0 : index
    %c0_10 = arith.constant 0 : index
    %9 = vector.load %arg2[%c0_8, %c1, %c0_9, %c0_10] : memref<1x3x2x128xf32, #tpu.memory_space<vmem>>, vector<1x1x2x128xf32>
    %10 = vector.shape_cast %9 : vector<1x1x2x128xf32> to vector<1x2x128xf32>
    %cst_11 = arith.constant 4.46428537 : f32
    %11 = vector.broadcast %cst_11 : f32 to vector<1x2x128xf32>
    %12 = arith.mulf %10, %11 : vector<1x2x128xf32>
    %cst_12 = arith.constant -2.03571415 : f32
    %13 = vector.broadcast %cst_12 : f32 to vector<1x2x128xf32>
    %14 = arith.addf %12, %13 : vector<1x2x128xf32>
    %c0_13 = arith.constant 0 : index
    %c1_14 = arith.constant 1 : index
    %c0_15 = arith.constant 0 : index
    %c0_16 = arith.constant 0 : index
    %15 = vector.load %arg3[%c0_13, %c1_14, %c0_15, %c0_16] : memref<1x3x2x128xf32, #tpu.memory_space<vmem>>, vector<1x1x2x128xf32>
    %16 = vector.shape_cast %15 : vector<1x1x2x128xf32> to vector<1x2x128xf32>
    %17 = vector.shape_cast %14 : vector<1x2x128xf32> to vector<1x1x2x128xf32>
    tpu.vector_store %arg3[%c0_13, %c1_14, %c0_15, %c0_16], %17 {strides = array<i32>} : memref<1x3x2x128xf32, #tpu.memory_space<vmem>>, vector<1x1x2x128xf32>,
    %c0_17 = arith.constant 0 : index
    %c2 = arith.constant 2 : index
    %c0_18 = arith.constant 0 : index
    %c0_19 = arith.constant 0 : index
    %18 = vector.load %arg2[%c0_17, %c2, %c0_18, %c0_19] : memref<1x3x2x128xf32, #tpu.memory_space<vmem>>, vector<1x1x2x128xf32>
    %19 = vector.shape_cast %18 : vector<1x1x2x128xf32> to vector<1x2x128xf32>
    %cst_20 = arith.constant 4.44444466 : f32
    %20 = vector.broadcast %cst_20 : f32 to vector<1x2x128xf32>
    %21 = arith.mulf %19, %20 : vector<1x2x128xf32>
    %cst_21 = arith.constant -1.80444443 : f32
    %22 = vector.broadcast %cst_21 : f32 to vector<1x2x128xf32>
    %23 = arith.addf %21, %22 : vector<1x2x128xf32>
    %c0_22 = arith.constant 0 : index
    %c2_23 = arith.constant 2 : index
    %c0_24 = arith.constant 0 : index
    %c0_25 = arith.constant 0 : index
    %24 = vector.load %arg3[%c0_22, %c2_23, %c0_24, %c0_25] : memref<1x3x2x128xf32, #tpu.memory_space<vmem>>, vector<1x1x2x128xf32>
    %25 = vector.shape_cast %24 : vector<1x1x2x128xf32> to vector<1x2x128xf32>
    %26 = vector.shape_cast %23 : vector<1x2x128xf32> to vector<1x1x2x128xf32>
    tpu.vector_store %arg3[%c0_22, %c2_23, %c0_24, %c0_25], %26 {strides = array<i32>} : memref<1x3x2x128xf32, #tpu.memory_space<vmem>>, vector<1x1x2x128xf32>,
    return
  }
  func.func @transform_0(%arg0: i32, %arg1: i32) -> (i32, i32, i32, i32) {
    %c0_i32 = arith.constant 0 : i32
    %c0_i32_0 = arith.constant 0 : i32
    %c0_i32_1 = arith.constant 0 : i32
    return %arg0, %c0_i32, %arg1, %c0_i32_0 : i32, i32, i32, i32
  }
  func.func @transform_1(%arg0: i32, %arg1: i32) -> (i32, i32, i32, i32) {
    %c0_i32 = arith.constant 0 : i32
    %c0_i32_0 = arith.constant 0 : i32
    %c0_i32_1 = arith.constant 0 : i32
    return %arg0, %c0_i32, %arg1, %c0_i32_0 : i32, i32, i32, i32
  }
}

</mosaic_0001>

<bundles_post_ra>
// kernel: tpu_custom_call.1
= control target key start
LH: loop header
LB: loop body
LE: loop exit
PB: predicated region body
PF: predicated region fallthrough
CT: control target
= control target key end

     0   :  { %6 = vsyncpa [#allocation3], 0  ;;  %s623_s0 = inlined_call_operand.hbm [shape: f32[2,3,2,128], index: 0, kind: input, shape index: {}]   ;;  %s624_s1 = inlined_call_operand.hbm [shape: f32[2,3,2,128], index: 1, kind: output, shape index: {}]  }
   0x1   :  { %8 = vsyncpa [#allocation3 + $0x1], 0 }
   0x2   :  { %9 = vsyncpa [#allocation4], 0 }
   0x3   :  { %11 = vsyncpa [#allocation4 + $0x1], 0  ;;  %s477_s6 = smov 0   ;;  %s479_s7 = smov 0  }
   0x4   :  { %s481_s8 = smov 0   ;;  %s483_s9 = smov 0  }
   0x5   :  { %s485_s10 = smov 0   ;;  %s487_s11 = smov 0  }
   0x6 LB: > { %s268_s12 = sadd.s32 4294967295, %s459_s11   ;;  %s269_s13 = sadd.s32 4294967294, %s459_s11   ;;  %s459_s11 = sphi %s487_s11, %s17_s11   ;;  %s455_s10 = sphi %s485_s10, %s635_s10   ;;  %s451_s9 = sphi %s483_s9, %s634_s9   ;;  %s447_s8 = sphi %s481_s8, %s633_s8   ;;  %s443_s7 = sphi %s479_s7, %s632_s7   ;;  %s439_s6 = sphi %s477_s6, %s631_s6  }
   0x7   : > { %s29_s14 = sadd.s32 1, %s455_s10  ;;  %s38_s15 = sadd.s32 1, %s447_s8 }
   0x8   : > { %p31_p0 = scmp.ge.s32.totalorder %s29_s14, 2  ;;  %p45_p1 = scmp.ne.s32.totalorder %s447_s8, %s443_s7 }
   0x9   : > { %p46_p2 = scmp.eq.s32.totalorder %s459_s11, 0  ;;  %p51_p3 = scmp.ne.s32.totalorder %s443_s7, %s439_s6 }
   0xa   : > { %s637_s14 = smov (%p31_p0, %s29_s14), 0  ;;  %p52_p5 = scmp.eq.s32.totalorder %s268_s12, 0 }
   0xb   : > { %p518_p4 = por %p46_p2, %p45_p1  ;;  %s33_s17 = ssub.s32 %s455_s10, %s637_s14 }
   0xc   : > { %p77_p6 = scmp.eq.s32.totalorder %s268_s12, 1  ;;  %p36_p7 = scmp.eq.s32.totalorder %s33_s17, 0 }
   0xd   : > { %p524_p8 = por %p52_p5, %p51_p3  ;;  %p83_p10 = scmp.eq.s32.totalorder %s269_s13, 1 }
   0xe   : > { %p528_p9 = por %p77_p6, %p45_p1  ;;  %p297_p13 = scmp.lt.s32.totalorder %s459_s11, 2 }
   0xf   : > { %s533_s20 = scalar_select %p36_p7, %s447_s8, %s38_s15  }
  0x10   : > { %p535_p11 = por %p83_p10, %p51_p3  ;;  %s103_s22 = sand.u32 1, %s447_s8  }
  0x11   : > { %s281_s23 = smul.u32 6, %s103_s22  ;;  %p545_p0 = pnand %p297_p13, %p518_p4 }
  0x12   : > { %s282_s24 = smul.u32 96, %s455_s10  ;;  %p273_p1 = scmp.ge.s32.totalorder %s459_s11, 1 }
  0x13   : > { %s107_s29 = scalar_lea.vmem [#allocation2], %s281_s23  ;;  %s104_s2 = scalar_lea.sflag [#allocation3], %s103_s22 }
  0x14   : > { %s114_s28 = scalar_lea.hbm %s623_s0, %s282_s24  ;;  %s115_s30 = sshll.u32 %s107_s29, 4  ;;  %s116_s30 = int_to_ptr.vmem [resolvable:$true] %s115_s30 }
  0x15   : > { %p353_p2 = pneg %p545_p0  ;;  %s364_s3 = scalar_lea.vmem %s116_s30, 96 }
  0x16   : > { %p365_p3 = scmp.ne.s32.totalorder %s116_s30, %s364_s3  ;;  %s461_s4 = smov [#allocation2]  }
  0x17   : > { %s369_s5 = sshll.u32 %s461_s4, 4  ;;  %s370_s5 = int_to_ptr.vmem [resolvable:$false] %s369_s5 }
  0x18   : > { %p367_p5 = pnand %p365_p3, %p353_p2  ;;  %s371_s12 = scalar_lea.vmem %s370_s5, 192 }
  0x19   : > { %p372_p4 = scmp.lt.s32.totalorder %s116_s30, %s370_s5  ;;  %p373_p7 = scmp.lt.s32.totalorder %s371_s12, %s364_s3 }
  0x1a   : > { %p368_p6 = pneg %p367_p5 }
  0x1b   : > { %p374_p10 = por %p373_p7, %p372_p4 }
  0x1d   : > { %p375_p13 = pnand %p374_p10, %p368_p6 }
  0x1f   : > { %378 = shalt.err (!%p375_p13)
}
  0x20   : > { %s462_s13 = smov 32   ;;  %s463_s15 = smov 2  }
  0x21   : > { %292 = dma.hbm_to_vmem [thread:$0]  (!%p545_p0), %s114_s28, 96, %s116_s30, %s104_s2, %s462_s13, %s462_s13, %s463_s15  }
  0x22   : > { %p123_p12 = scmp.lt.s32.totalorder %s459_s11, 3 }
  0x24   : > { %p124_p2 = pnand %p273_p1, %p123_p12 }
  0x25   : > { %s561_s16 = sand.u32 (!%p124_p2), 1, %s443_s7  }
  0x26   : > { %127 = sbr.rel (%p124_p2) target bundleno = 70 (0x46), region = 24  ;;  %s130_s22 = scalar_lea.sflag (!%p124_p2), [#allocation3], %s561_s16 }
  0x27   : > { %s283_s17 = smul.u32 (!%p124_p2), 6, %s561_s16 }
  0x29   : > { %s133_s23 = scalar_lea.vmem (!%p124_p2), [#allocation2], %s283_s17 }
  0x2b   : > { %430 = dma.done.wait (%p524_p8), %s130_s22, 96  }
  0x2c   : > { %432 = vsyncadd (%p524_p8), %s130_s22, 4294967200  ;;  %s151_s24 = scalar_lea.vmem [#allocation5], %s283_s17  ;;  %s284_s26 = smul.u32 96, %s451_s9  ;;  %v152_v0 = vld [vmem:[%s133_s23] sm:$0x3] }
  0x2d   : > { %s183_s25 = sshll.u32 %s151_s24, 4  ;;  %v274_v1 = vld [vmem:[%s133_s23 + $0x2] sm:$0x3]  ;;  %v276_v2 = vld [vmem:[%s133_s23 + $0x4] sm:$0x3]  ;;  %s169_s9 = scalar_lea.sflag [#allocation4], %s561_s16  ;;  %s570_s25 = int_to_ptr.vmem [resolvable:$true] %s183_s25 }
  0x2e   : > { %v153_v3 = vmul.f32 4.366812, %v152_v0  ;;  %v158_v4 = vmul.f32 4.4642854, %v274_v1  ;;  %v164_v5 = vmul.f32 4.4444447, %v276_v2  ;;  %s575_s28 = scalar_lea.hbm %s624_s1, %s284_s26 }
  0x2f   : > { %s379_s29 = scalar_lea.vmem %s570_s25, 96  ;;  %s464_s30 = smov [#allocation5]  }
  0x30   : > { %v154_v6 = vadd.f32 -2.117904, %v153_v3  ;;  %v159_v7 = vadd.f32 -2.0357141, %v158_v4  ;;  %v165_v8 = vadd.f32 -1.8044444, %v164_v5  ;;  %p380_p8 = scmp.ne.s32.totalorder %s570_s25, %s379_s29 }
  0x31   : > { %s383_s2 = sshll.u32 %s464_s30, 4  ;;  %s384_s2 = int_to_ptr.vmem [resolvable:$false] %s383_s2 }
  0x32   : > { %155 = vst [vmem:[%s151_s24] sm:$0x3] %v154_v6  ;;  %275 = vst [vmem:[%s151_s24 + $0x2] sm:$0x3] %v159_v7  ;;  %p381_p12 = pnand %p380_p8, %p528_p9  ;;  %s385_s3 = scalar_lea.vmem %s384_s2, 192 }
  0x33   : > { %277 = vst [vmem:[%s151_s24 + $0x4] sm:$0x3] %v165_v8  ;;  %p386_p1 = scmp.lt.s32.totalorder %s570_s25, %s384_s2  ;;  %p387_p3 = scmp.lt.s32.totalorder %s385_s3, %s379_s29 }
  0x34   : > { %p382_p0 = pneg %p381_p12 }
  0x35   : > { %p388_p5 = por %p387_p3, %p386_p1 }
  0x37   : > { %p389_p6 = pnand %p388_p5, %p382_p0 }
  0x39   : > { %392 = shalt.err (!%p389_p6)
}
  0x3a   : > { %s393_s4 = scalar_lea.hbm %s575_s28, 96  ;;  %s397_s13 = scalar_lea.hbm %s624_s1, 192 }
  0x3b   : > { %p394_p4 = scmp.ne.s32.totalorder %s575_s28, %s393_s4  ;;  %p398_p13 = scmp.lt.s32.totalorder %s575_s28, %s624_s1 }
  0x3c   : > { %p399_p2 = scmp.lt.s32.totalorder %s397_s13, %s393_s4 }
  0x3d   : > { %p395_p7 = pnand %p394_p4, %p528_p9 }
  0x3e   : > { %p400_p8 = por %p399_p2, %p398_p13 }
  0x3f   : > { %p396_p10 = pneg %p395_p7 }
  0x41   : > { %p401_p12 = pnand %p400_p8, %p396_p10 }
  0x43   : > { %404 = shalt.err (!%p401_p12)
}
  0x44   : > { %s465_s22 = smov 32   ;;  %s466_s23 = smov 2  }
  0x45   : > { %287 = dma.vmem_to_hbm [thread:$0]  (%p528_p9), %s570_s25, 96, %s575_s28, %s169_s9, %s465_s22, %s465_s22, %s466_s23  }
  0x46 PF: > { %s198_s24 = sand.u32 1, %s439_s6   ;;  %p630_p0 = scmp.ge.s32.totalorder %s459_s11, 2 }
  0x47   : > { %s199_s26 = scalar_lea.sflag [#allocation4], %s198_s24 }
  0x48   : > { %p294_p1 = pnand %p630_p0, %p535_p11 }
  0x4a   : > { %p295_p3 = pneg %p294_p1 }
  0x4c   : > { %434 = dma.done.wait (%p295_p3), %s199_s26, 96  }
  0x4d   : > { %436 = vsyncadd (%p295_p3), %s199_s26, 4294967200  ;;  %s17_s11 = sadd.s32 1, %s459_s11   ;;  %s631_s6 = smov %s443_s7 }
  0x4e   : > { %p14_p5 = scmp.ge.s32.totalorder %s17_s11, 4   ;;  %s632_s7 = smov %s447_s8 }
  0x4f   : > { %s633_s8 = smov %s533_s20  ;;  %s634_s9 = smov %s455_s10 }
  0x50   : > { %s635_s10 = smov %s637_s14  ;;  %16 = sbr.rel (!%p14_p5) target bundleno = 6 (0x6), region = 73 }
  0x55   :  { %204 = vsyncpa [#allocation3], 1 }
  0x56   :  { %206 = vsyncpa [#allocation3 + $0x1], 1 }
  0x57   :  { %207 = vsyncpa [#allocation4], 1 }
  0x58   :  { %209 = vsyncpa [#allocation4 + $0x1], 1 }

</bundles_post_ra>
